<compile_context>
chip_gen: v6e
topology: v6e:2x2x1
jax: 0.10.0
libtpu: 0.0.40
codegen_flags: <defaults>
</compile_context>

<pallas_src>
import functools
from typing import NamedTuple

import jax
import jax.numpy as jnp
from jax import lax
from jax.experimental import pallas as pl
from jax.experimental.pallas import tpu as pltpu

_MiB = 1024 * 1024


def _round_up(x, m):
    return ((x + m - 1) // m) * m


def _round_down(x, m):
    return max(m, (x // m) * m)


def _tpu_vmem_capacity_bytes():
    try:
        return int(pltpu.get_tpu_info().vmem_capacity_bytes)
    except Exception:
        return 64 * _MiB          # conservative fallback (v7x per-TC size)


def _device_kind():
    try:
        return jax.devices()[0].device_kind.lower()
    except Exception:
        return ""


def _vmem_bytes(tm, th, d, xb, wb, ob, ewb, wbuf=2):
    """Rough VMEM footprint estimate for one pipelined grid step."""
    io = 2 * (tm * d * xb + tm * d * ob)                # x / out tiles, double-buffered
    w = wbuf * (d * 2 * th * wb + th * d * wb)          # fused up|gate + down weight tiles
    b = 2 * (2 * th * 4 + d * 4)                        # f32 bias tiles
    acc = tm * d * 4                                    # f32 accumulator scratch
    interm = tm * 2 * th * (4 + ewb) + tm * th * ewb    # ug (f32 + cast copy) + gated
    return io + w + b + acc + interm


def _th_options(h):
    """Hidden-tile sizes: divisors of H that are multiples of 128 (lane-aligned
    up|gate split).  Falls back to H only when no such divisor exists."""
    opts = [t for t in range(h, 0, -1) if h % t == 0 and t % 128 == 0]
    return opts if opts else [h]


def _fit_tiles(m, d, h, tm_target, tm_align, th_target, xb, wb, ob, ewb, budget):
    m8 = _round_up(m, 8)
    tm = m8 if m8 <= tm_align else _round_down(min(tm_target, m8), tm_align)
    th_opts = _th_options(h)
    cand = [t for t in th_opts if t <= th_target] or [th_opts[-1]]
    th = cand[0]
    # Shrink th first (tm is the arithmetic-intensity lever), then tm.
    while _vmem_bytes(tm, th, d, xb, wb, ob, ewb) > budget:
        smaller_th = [t for t in cand if t < th]
        if smaller_th:
            th = smaller_th[0]
        elif tm > tm_align:
            tm = tm - tm_align
        elif tm > 8:
            tm = _round_up(tm // 2, 8)
        else:
            break
    return tm, th


class FFNPlan(NamedTuple):
    tm: int
    th: int
    compute_dtype: str
    ew_dtype: str
    precision_highest: bool
    vmem_limit_bytes: int
    buffer_weights: bool


def make_ffn_plan(m, d, h, x_dtype=jnp.float32, out_dtype=None,
                  compute_dtype=jnp.bfloat16):
    """Generation-aware tile / dtype / VMEM plan.  Computed once per config."""
    out_dtype = x_dtype if out_dtype is None else out_dtype
    cd = jnp.dtype(compute_dtype)
    xb = jnp.dtype(x_dtype).itemsize
    ob = jnp.dtype(out_dtype).itemsize
    wb = cd.itemsize

    vmem_cap = _tpu_vmem_capacity_bytes()
    kind = _device_kind()
    is_v5 = "v5" in kind
    small_vmem = vmem_cap <= 72 * _MiB                 # v7x-class: 64 MiB per TC

    budget = max(32 * _MiB, min(int(0.85 * vmem_cap), vmem_cap - 10 * _MiB))

    if is_v5:
        tm_target, tm_align, th_target = 512, 128, 512   # crossover ~240 rows
        ew = jnp.dtype(jnp.float32)                      # no bf16 VPU/EUP on v5e
    elif small_vmem:
        tm_target, tm_align, th_target = 640, 128, 256   # v7x: ~620 rows, 64 MiB VMEM
        ew = cd
    else:
        tm_target, tm_align, th_target = 1024, 256, 512  # v6e: ~660-700 rows, 128 MiB
        ew = cd
    if cd == jnp.dtype(jnp.float32):
        ew = jnp.dtype(jnp.float32)
    ewb = ew.itemsize

    tm, th = _fit_tiles(m, d, h, tm_target, tm_align, th_target,
                        xb, wb, ob, ewb, budget)

    n_row_tiles = (m + tm - 1) // tm
    buffer_weights = (not small_vmem and n_row_tiles >= 4 and
                      _vmem_bytes(tm, th, d, xb, wb, ob, ewb, wbuf=3) <= budget)
    wbuf = 3 if buffer_weights else 2
    vmem_est = _vmem_bytes(tm, th, d, xb, wb, ob, ewb, wbuf=wbuf)
    vmem_limit = int(min(max(vmem_est + 8 * _MiB, 32 * _MiB), vmem_cap - 4 * _MiB))

    return FFNPlan(tm=int(tm), th=int(th),
                   compute_dtype=cd.name, ew_dtype=ew.name,
                   precision_highest=(cd == jnp.dtype(jnp.float32)),
                   vmem_limit_bytes=vmem_limit,
                   buffer_weights=bool(buffer_weights))


def pack_ffn_params(plan, w_up, b_up, w_gate, b_gate, w_down, b_down):
    """One-time weight packing, hoisted out of the forward path.

    Interleaves the up/gate weights per hidden tile of width plan.th so that
    packed block h of the (D, 2H) matrix is [up_tile_h | gate_tile_h]; this
    lets the kernel do one fused MXU pass per hidden tile.  Also pre-casts
    weights to the MXU compute dtype and biases to f32."""
    cd = jnp.dtype(plan.compute_dtype)
    d, h = w_up.shape
    th = plan.th
    assert h % th == 0, "hidden dim must be divisible by the hidden tile"
    nh = h // th
    wu = w_up.astype(cd).reshape(d, nh, th)
    wg = w_gate.astype(cd).reshape(d, nh, th)
    w_ug = jnp.concatenate([wu, wg], axis=-1).reshape(d, 2 * h)
    bu = b_up.astype(jnp.float32).reshape(1, nh, th)
    bg = b_gate.astype(jnp.float32).reshape(1, nh, th)
    b_ug = jnp.concatenate([bu, bg], axis=-1).reshape(1, 2 * h)
    w_d = w_down.astype(cd)
    b_d = b_down.astype(jnp.float32).reshape(1, d)
    return w_ug, b_ug, w_d, b_d


def _ffn_kernel(x_ref, wug_ref, bug_ref, wd_ref, bd_ref, o_ref, acc_ref,
                *, th, compute_dtype, ew_dtype, precision):
    """One (row-tile, hidden-tile) step of the SwiGLU FFN."""
    h_idx = pl.program_id(1)

    @pl.when(h_idx == 0)
    def _init():
        acc_ref[...] = jnp.zeros_like(acc_ref)

    # Activation cast happens in-kernel (no standalone XLA cast pass over x).
    x = x_ref[...].astype(compute_dtype)                                 # (tm, D)

    # Fused up|gate projection: one MXU pass of width 2*th, f32 accumulate.
    ug = jnp.dot(x, wug_ref[...], preferred_element_type=jnp.float32,
                 precision=precision)                                    # (tm, 2*th)
    ug = (ug + bug_ref[...]).astype(ew_dtype)
    up = ug[:, :th]
    gate = ug[:, th:]
    hact = up * (gate * jax.nn.sigmoid(gate))                            # SwiGLU

    # Accumulate the down projection over hidden tiles in f32.
    acc_ref[...] += jnp.dot(hact.astype(compute_dtype), wd_ref[...],
                            preferred_element_type=jnp.float32,
                            precision=precision)                         # (tm, D)

    @pl.when(h_idx == pl.num_programs(1) - 1)
    def _finalize():
        # b_down added exactly once, in the epilogue.
        o_ref[...] = (acc_ref[...] + bd_ref[...]).astype(o_ref.dtype)


@functools.partial(jax.jit, static_argnames=("plan",))
def feed_forward(x, w_ug, b_ug, w_d, b_d, *, plan):
    """x: (B, T, D).  Packed params from pack_ffn_params.  Eval-mode dropout."""
    B, T, D = x.shape
    H = w_d.shape[0]
    assert w_ug.shape == (D, 2 * H) and w_d.shape == (H, D)
    M = B * T
    tm, th = plan.tm, plan.th
    assert H % th == 0
    nh = H // th

    # Pad rows so the row grid divides evenly; pad rows are discarded.
    Mp = _round_up(M, tm)
    x2 = x.reshape(M, D)
    if Mp != M:
        x2 = jnp.pad(x2, ((0, Mp - M), (0, 0)))

    grid = (Mp // tm, nh)
    compute_dtype = jnp.dtype(plan.compute_dtype)
    ew_dtype = jnp.dtype(plan.ew_dtype)
    precision = (lax.Precision.HIGHEST if plan.precision_highest
                 else lax.Precision.DEFAULT)

    # Extra lookahead on the weight streams only when the plan asked for it.
    w_kwargs = dict(pipeline_mode=pl.Buffered(3)) if plan.buffer_weights else {}

    kernel = functools.partial(_ffn_kernel, th=th, compute_dtype=compute_dtype,
                               ew_dtype=ew_dtype, precision=precision)

    xb = x.dtype.itemsize
    wb = compute_dtype.itemsize
    ob = x.dtype.itemsize
    flops = 6 * Mp * D * H + 4 * Mp * H
    bytes_accessed = (Mp * D * (xb + ob)
                      + grid[0] * (w_ug.size * wb + w_d.size * wb
                                   + b_ug.size * 4 + b_d.size * 4))

    out2 = pl.pallas_call(
        kernel,
        out_shape=jax.ShapeDtypeStruct((Mp, D), x.dtype),
        grid_spec=pltpu.PrefetchScalarGridSpec(
            num_scalar_prefetch=0,
            grid=grid,
            in_specs=[
                pl.BlockSpec((tm, D), lambda i, h: (i, 0)),                   # x rows
                pl.BlockSpec((D, 2 * th), lambda i, h: (0, h), **w_kwargs),   # [up|gate] W
                pl.BlockSpec((1, 2 * th), lambda i, h: (0, h)),               # [up|gate] b
                pl.BlockSpec((th, D), lambda i, h: (h, 0), **w_kwargs),       # W_down
                pl.BlockSpec((1, D), lambda i, h: (0, 0)),                    # b_down
            ],
            out_specs=pl.BlockSpec((tm, D), lambda i, h: (i, 0)),
            scratch_shapes=[pltpu.VMEM((tm, D), jnp.float32)],
        ),
        compiler_params=pltpu.CompilerParams(
            dimension_semantics=("parallel", "arbitrary"),
            vmem_limit_bytes=plan.vmem_limit_bytes,
        ),
        cost_estimate=pl.CostEstimate(
            flops=flops, transcendentals=Mp * H, bytes_accessed=bytes_accessed),
    )(x2, w_ug, b_ug, w_d, b_d)

    return out2[:M].reshape(B, T, D)


def _reference(x, w_up, b_up, w_gate, b_gate, w_down, b_down):
    up = x @ w_up + b_up[0]
    gate = x @ w_gate + b_gate[0]
    h = up * (gate * jax.nn.sigmoid(gate))
    return h @ w_down + b_down[0]


if __name__ == "__main__":
    # Small config: batch=2, seq=8, n_embed=32  ->  hidden = 4*n_embed = 128.
    B, T, D = 2, 8, 32
    H = 4 * D

    key = jax.random.PRNGKey(0)
    kx, ku, kg, kd, kbu, kbg, kbd = jax.random.split(key, 7)

    x = jax.random.normal(kx, (B, T, D), dtype=jnp.float32)
    # nn.Linear-style params stored pre-transposed as (in, out).
    w_up = jax.random.normal(ku, (D, H), dtype=jnp.float32) * (1.0 / D ** 0.5)
    w_gate = jax.random.normal(kg, (D, H), dtype=jnp.float32) * (1.0 / D ** 0.5)
    w_down = jax.random.normal(kd, (H, D), dtype=jnp.float32) * (1.0 / H ** 0.5)
    b_up = jax.random.normal(kbu, (1, H), dtype=jnp.float32) * 0.02
    b_gate = jax.random.normal(kbg, (1, H), dtype=jnp.float32) * 0.02
    b_down = jax.random.normal(kbd, (1, D), dtype=jnp.float32) * 0.02

    ref = _reference(x, w_up, b_up, w_gate, b_gate, w_down, b_down)

    # --- Strict f32 path (MXU precision HIGHEST) -------------------------------
    plan_f32 = make_ffn_plan(B * T, D, H, x_dtype=x.dtype,
                             compute_dtype=jnp.float32)
    packed_f32 = pack_ffn_params(plan_f32, w_up, b_up, w_gate, b_gate,
                                 w_down, b_down)   # one-time, outside forward
    out_f32 = feed_forward(x, *packed_f32, plan=plan_f32)
    out_f32 = jax.block_until_ready(out_f32)
    assert out_f32.shape == (B, T, D)
    assert jnp.allclose(out_f32, ref, atol=1e-4, rtol=1e-4), "f32 mismatch vs reference"

    # --- Default mixed-precision path (bf16 MXU operands, f32 accumulation) ----
    plan_mp = make_ffn_plan(B * T, D, H, x_dtype=x.dtype,
                            compute_dtype=jnp.bfloat16)
    packed_mp = pack_ffn_params(plan_mp, w_up, b_up, w_gate, b_gate,
                                w_down, b_down)    # one-time, outside forward
    out_mp = feed_forward(x, *packed_mp, plan=plan_mp)
    out_mp = jax.block_until_ready(out_mp)
    assert out_mp.shape == (B, T, D)
    assert jnp.allclose(out_mp, ref, atol=1e-1, rtol=1e-1), "bf16 mismatch vs reference"

    print("KERNEL_OK")
</pallas_src>

<mosaic_0001>
module attributes {stable_mosaic.version = 11 : i64} {
  func.func @_ffn_kernel(%arg0: i32, %arg1: i32, %arg2: memref<16x32xf32, #tpu.memory_space<vmem>>, %arg3: memref<32x256xf32, #tpu.memory_space<vmem>>, %arg4: memref<1x256xf32, #tpu.memory_space<vmem>>, %arg5: memref<128x32xf32, #tpu.memory_space<vmem>>, %arg6: memref<1x32xf32, #tpu.memory_space<vmem>>, %arg7: memref<16x32xf32, #tpu.memory_space<vmem>>, %arg8: memref<16x32xf32, #tpu.memory_space<vmem>>) attributes {dimension_semantics = [#tpu.dimension_semantics<parallel>, #tpu.dimension_semantics<arbitrary>], iteration_bounds = array<i64: 1, 1>, scalar_prefetch = 0 : i64, scratch_operands = 1 : i64, tpu.core_type = #tpu.core_type<tc>, window_params = [{transform_indices = @transform_0, window_bounds = array<i64: 16, 32>}, {transform_indices = @transform_1, window_bounds = array<i64: 32, 256>}, {transform_indices = @transform_2, window_bounds = array<i64: 1, 256>}, {transform_indices = @transform_3, window_bounds = array<i64: 128, 32>}, {pipeline_mode = #tpu.pipeline_mode<synchronous>, transform_indices = @transform_4, window_bounds = array<i64: 1, 32>}, {transform_indices = @transform_5, window_bounds = array<i64: 16, 32>}]} {
    %c0_i32 = arith.constant 0 : i32
    %0 = arith.cmpi eq, %arg1, %c0_i32 : i32
    %1 = arith.extui %0 : i1 to i32
    %c0_i32_0 = arith.constant 0 : i32
    %2 = arith.cmpi ne, %1, %c0_i32_0 : i32
    scf.if %2 {
      %cst_16 = arith.constant 0.000000e+00 : f32
      %26 = vector.broadcast %cst_16 : f32 to vector<16x32xf32>
      %c0_17 = arith.constant 0 : index
      %c0_18 = arith.constant 0 : index
      %27 = vector.load %arg8[%c0_17, %c0_18] : memref<16x32xf32, #tpu.memory_space<vmem>>, vector<16x32xf32>
      tpu.vector_store %arg8[%c0_17, %c0_18], %26 {strides = array<i32>} : memref<16x32xf32, #tpu.memory_space<vmem>>, vector<16x32xf32>,
    } else {
    }
    %c0 = arith.constant 0 : index
    %c0_1 = arith.constant 0 : index
    %3 = vector.load %arg2[%c0, %c0_1] : memref<16x32xf32, #tpu.memory_space<vmem>>, vector<16x32xf32>
    %c0_2 = arith.constant 0 : index
    %c0_3 = arith.constant 0 : index
    %4 = vector.load %arg3[%c0_2, %c0_3] : memref<32x256xf32, #tpu.memory_space<vmem>>, vector<32x256xf32>
    %cst = arith.constant dense<0.000000e+00> : vector<16x256xf32>
    %5 = tpu.matmul %3, %4, %cst {dimension_numbers = #tpu.dot_dimension_numbers<[1], [0], [0], [1], [0, 0, 1, 1], [], []>, precision = #tpu.contract_precision<fp32>} : vector<16x32xf32>, vector<32x256xf32>, vector<16x256xf32> -> vector<16x256xf32>
    %c0_4 = arith.constant 0 : index
    %c0_5 = arith.constant 0 : index
    %6 = vector.load %arg4[%c0_4, %c0_5] : memref<1x256xf32, #tpu.memory_space<vmem>>, vector<1x256xf32>
    %7 = vector.broadcast %6 : vector<1x256xf32> to vector<16x256xf32>
    %8 = arith.addf %5, %7 : vector<16x256xf32>
    %9 = vector.extract_strided_slice %8 {offsets = [0, 0], sizes = [16, 128], strides = [1, 1]} : vector<16x256xf32> to vector<16x128xf32>
    %10 = vector.extract_strided_slice %8 {offsets = [0, 128], sizes = [16, 128], strides = [1, 1]} : vector<16x256xf32> to vector<16x128xf32>
    %11 = arith.negf %10 : vector<16x128xf32>
    %12 = math.exp %11 : vector<16x128xf32>
    %cst_6 = arith.constant 1.000000e+00 : f32
    %13 = vector.broadcast %cst_6 : f32 to vector<16x128xf32>
    %14 = arith.addf %13, %12 : vector<16x128xf32>
    %15 = arith.divf %13, %14 : vector<16x128xf32>
    %16 = arith.mulf %10, %15 : vector<16x128xf32>
    %17 = arith.mulf %9, %16 : vector<16x128xf32>
    %c0_7 = arith.constant 0 : index
    %c0_8 = arith.constant 0 : index
    %18 = vector.load %arg8[%c0_7, %c0_8] : memref<16x32xf32, #tpu.memory_space<vmem>>, vector<16x32xf32>
    %c0_9 = arith.constant 0 : index
    %c0_10 = arith.constant 0 : index
    %19 = vector.load %arg5[%c0_9, %c0_10] : memref<128x32xf32, #tpu.memory_space<vmem>>, vector<128x32xf32>
    %cst_11 = arith.constant dense<0.000000e+00> : vector<16x32xf32>
    %20 = tpu.matmul %17, %19, %cst_11 {dimension_numbers = #tpu.dot_dimension_numbers<[1], [0], [0], [1], [0, 0, 1, 1], [], []>, precision = #tpu.contract_precision<fp32>} : vector<16x128xf32>, vector<128x32xf32>, vector<16x32xf32> -> vector<16x32xf32>
    %21 = arith.addf %18, %20 : vector<16x32xf32>
    %c0_12 = arith.constant 0 : index
    %c0_13 = arith.constant 0 : index
    %22 = vector.load %arg8[%c0_12, %c0_13] : memref<16x32xf32, #tpu.memory_space<vmem>>, vector<16x32xf32>
    tpu.vector_store %arg8[%c0_12, %c0_13], %21 {strides = array<i32>} : memref<16x32xf32, #tpu.memory_space<vmem>>, vector<16x32xf32>,
    %c0_i32_14 = arith.constant 0 : i32
    %23 = arith.cmpi eq, %arg1, %c0_i32_14 : i32
    %24 = arith.extui %23 : i1 to i32
    %c0_i32_15 = arith.constant 0 : i32
    %25 = arith.cmpi ne, %24, %c0_i32_15 : i32
    scf.if %25 {
      %c0_16 = arith.constant 0 : index
      %c0_17 = arith.constant 0 : index
      %26 = vector.load %arg8[%c0_16, %c0_17] : memref<16x32xf32, #tpu.memory_space<vmem>>, vector<16x32xf32>
      %c0_18 = arith.constant 0 : index
      %c0_19 = arith.constant 0 : index
      %27 = vector.load %arg6[%c0_18, %c0_19] : memref<1x32xf32, #tpu.memory_space<vmem>>, vector<1x32xf32>
      %28 = vector.broadcast %27 : vector<1x32xf32> to vector<16x32xf32>
      %29 = arith.addf %26, %28 : vector<16x32xf32>
      %c0_20 = arith.constant 0 : index
      %c0_21 = arith.constant 0 : index
      %30 = vector.load %arg7[%c0_20, %c0_21] : memref<16x32xf32, #tpu.memory_space<vmem>>, vector<16x32xf32>
      tpu.vector_store %arg7[%c0_20, %c0_21], %29 {strides = array<i32>} : memref<16x32xf32, #tpu.memory_space<vmem>>, vector<16x32xf32>,
    } else {
    }
    return
  }
  func.func @transform_0(%arg0: i32, %arg1: i32) -> (i32, i32) {
    %c0_i32 = arith.constant 0 : i32
    %c0_i32_0 = arith.constant 0 : i32
    return %arg0, %c0_i32 : i32, i32
  }
  func.func @transform_1(%arg0: i32, %arg1: i32) -> (i32, i32) {
    %c0_i32 = arith.constant 0 : i32
    %c0_i32_0 = arith.constant 0 : i32
    return %c0_i32, %arg1 : i32, i32
  }
  func.func @transform_2(%arg0: i32, %arg1: i32) -> (i32, i32) {
    %c0_i32 = arith.constant 0 : i32
    %c0_i32_0 = arith.constant 0 : i32
    return %c0_i32, %arg1 : i32, i32
  }
  func.func @transform_3(%arg0: i32, %arg1: i32) -> (i32, i32) {
    %c0_i32 = arith.constant 0 : i32
    %c0_i32_0 = arith.constant 0 : i32
    return %arg1, %c0_i32 : i32, i32
  }
  func.func @transform_4(%arg0: i32, %arg1: i32) -> (i32, i32) {
    %c0_i32 = arith.constant 0 : i32
    %c0_i32_0 = arith.constant 0 : i32
    %c0_i32_1 = arith.constant 0 : i32
    return %c0_i32, %c0_i32_0 : i32, i32
  }
  func.func @transform_5(%arg0: i32, %arg1: i32) -> (i32, i32) {
    %c0_i32 = arith.constant 0 : i32
    %c0_i32_0 = arith.constant 0 : i32
    return %arg0, %c0_i32 : i32, i32
  }
}

</mosaic_0001>

<bundles_post_ra>
// kernel: feed_forward.1
= control target key start
LH: loop header
LB: loop body
LE: loop exit
PB: predicated region body
PF: predicated region fallthrough
CT: control target
= control target key end

     0   :  { %vm25_vm0 = vcmask 261120   ;;  %v1758_v9 = vmov 0.0   ;;  %s2362_s0 = inlined_call_operand.vmem [shape: f32[16,32], index: 0, kind: input, shape index: {}]   ;;  %s2363_s1 = inlined_call_operand.vmem [shape: f32[32,256], index: 1, kind: input, shape index: {}]   ;;  %s2364_s2 = inlined_call_operand.vmem [shape: f32[1,256], index: 2, kind: input, shape index: {}]   ;;  %s2365_s3 = inlined_call_operand.vmem [shape: f32[128,32], index: 3, kind: input, shape index: {}]   ;;  %s2366_s4 = inlined_call_operand.vmem [shape: f32[1,32], index: 4, kind: input, shape index: {}]   ;;  %s2367_s5 = inlined_call_operand.hbm [shape: f32[16,32], index: 5, kind: output, shape index: {}]  }
   0x1   :  { %v37_v0 = vld [vmem:[%s2363_s1 + $0x38] sm:$0xff]  ;;  %v36_v1 = vld [vmem:[%s2363_s1 + $0x30] sm:$0xff]  ;;  %v35_v2 = vld [vmem:[%s2363_s1 + $0x28] sm:$0xff]  ;;  %129 = vmatprep.mubr.f32.mxu0 %v1758_v9  ;;  %26 = vst.msk [vmem:[#allocation2] sm:$0xff] %vm25_vm0, %v1758_v9  ;;  %256 = vmatprep.mubr.f32.mxu1 %v1758_v9 }
   0x2   :  { %v1801_v3 = vand.u32 4294901760, %v37_v0  ;;  %v1803_v4 = vand.u32 4294901760, %v36_v1  ;;  %v1805_v5 = vand.u32 4294901760, %v35_v2  ;;  %v34_v6 = vld [vmem:[%s2363_s1 + $0x20] sm:$0xff]  ;;  %v33_v7 = vld [vmem:[%s2363_s1 + $0x18] sm:$0xff]  ;;  %v32_v8 = vld [vmem:[%s2363_s1 + $0x10] sm:$0xff] }
   0x3   :  { %27 = vst.msk [vmem:[#allocation2 + $0x8] sm:$0xff] %vm25_vm0, %v1758_v9  ;;  %v1822_v10 = vand.u32 4294901760, %v34_v6  ;;  %v1824_v11 = vand.u32 4294901760, %v33_v7  ;;  %v1826_v12 = vand.u32 4294901760, %v32_v8  ;;  %v31_v13 = vld [vmem:[%s2363_s1 + $0x8] sm:$0xff]  ;;  %v30_v14 = vld [vmem:[%s2363_s1] sm:$0xff] }
   0x4   :  { %v28_v15 = vld [vmem:[%s2362_s0] sm:$0xff]  ;;  %82 = vmatprep.subr.mxu0 %v1801_v3  ;;  %v1838_v16 = vand.u32 4294901760, %v31_v13  ;;  %v1841_v17 = vsub.f32 %v37_v0, %v1801_v3  ;;  %v1843_v18 = vand.u32 4294901760, %v30_v14  ;;  %v1846_v19 = vsub.f32 %v36_v1, %v1803_v4  ;;  %v29_v20 = vld [vmem:[%s2362_s0 + $0x8] sm:$0xff] }
   0x5   :  { %84 = vmatpush1.msra.mxu0 %v1803_v4  ;;  %v52_v21 = vsel %vm25_vm0, %v28_v15, 0  ;;  %v1854_v22 = vsub.f32 %v35_v2, %v1805_v5  ;;  %v1857_v23 = vsub.f32 %v34_v6, %v1822_v10  ;;  %v1860_v24 = vsub.f32 %v33_v7, %v1824_v11 }
   0x6   :  { %10 = vsyncpa [#allocation4], 0  ;;  %86 = vmatprep.subr.mxu0 %v1805_v5  ;;  %v178_v25 = vand.u32 4294901760, %v1841_v17  ;;  %v184_v26 = vand.u32 4294901760, %v1846_v19  ;;  %v1865_v27 = vand.u32 4294901760, %v52_v21  ;;  %v1868_v28 = vsub.f32 %v32_v8, %v1826_v12  ;;  %v682_v63 = vld [vmem:[%s2365_s3 + $0x78] sm:$0xff] }
   0x7   :  { %88 = vmatpush1.msra.mxu0 %v1822_v10  ;;  %v190_v29 = vand.u32 4294901760, %v1854_v22  ;;  %v196_v30 = vand.u32 4294901760, %v1857_v23  ;;  %v202_v31 = vand.u32 4294901760, %v1860_v24  ;;  %v55_v32 = vsel %vm25_vm0, %v29_v20, 0  ;;  %v681_v1 = vld [vmem:[%s2365_s3 + $0x70] sm:$0xff]  ;;  %v679_v8 = vld [vmem:[%s2365_s3 + $0x60] sm:$0xff] }
   0x8   :  { %90 = vmatprep.subr.mxu0 %v1824_v11  ;;  %v179_v33 = vsub.f32 %v1841_v17, %v178_v25  ;;  %v185_v34 = vsub.f32 %v1846_v19, %v184_v26  ;;  %v1883_v35 = vsub.f32 %v52_v21, %v1865_v27  ;;  %v208_v36 = vand.u32 4294901760, %v1868_v28  ;;  %s1759_s18 = smov [#allocation3]  }
   0x9   :  { %92 = vmatpush1.msra.mxu0 %v1826_v12  ;;  %v191_v37 = vsub.f32 %v1854_v22, %v190_v29  ;;  %v197_v38 = vsub.f32 %v1857_v23, %v196_v30  ;;  %v203_v39 = vsub.f32 %v1860_v24, %v202_v31  ;;  %v1896_v40 = vand.u32 4294901760, %v55_v32  ;;  %s1392_s19 = sshll.u32 %s1759_s18, 4  ;;  %s1393_s19 = int_to_ptr.vmem [resolvable:$true] %s1392_s19 }
   0xa   :  { %94 = vmatprep.subr.mxu0 %v1838_v16  ;;  %v180_v41 = vand.u32 4294901760, %v179_v33  ;;  %v186_v42 = vand.u32 4294901760, %v185_v34  ;;  %v132_v43 = vand.u32 4294901760, %v1883_v35  ;;  %v209_v44 = vsub.f32 %v1868_v28, %v208_v36  ;;  %s1736_s20 = scalar_lea.vmem %s1393_s19, 256  ;;  %p1741_p1 = scmp.lt.s32.totalorder %s1393_s19, %s1393_s19 }
   0xb   :  { %96 = vmatpush1.msra.mxu0 %v1843_v18  ;;  %v192_v45 = vand.u32 4294901760, %v191_v37  ;;  %v198_v46 = vand.u32 4294901760, %v197_v38  ;;  %v1905_v47 = vsub.f32 %v55_v32, %v1896_v40  ;;  %v204_v49 = vand.u32 4294901760, %v203_v39  ;;  %v674_v37 = vld [vmem:[%s2365_s3 + $0x38] sm:$0xff]  ;;  %p1737_p0 = scmp.ne.s32.totalorder %s1393_s19, %s1736_s20  ;;  %p1742_p2 = scmp.lt.s32.totalorder %s1736_s20, %s1736_s20 }
   0xc   :  { %181 = vmatprep.subr.mxu1 %v180_v41  ;;  %v133_v48 = vsub.f32 %v1883_v35, %v132_v43  ;;  %297 = vmatprep.subr.mxu0 %v1841_v17  ;;  %v213_v50 = vsub.f32 %v31_v13, %v1838_v16  ;;  %v219_v51 = vsub.f32 %v30_v14, %v1843_v18  ;;  %v210_v54 = vand.u32 4294901760, %v209_v44  ;;  %v678_v13 = vld [vmem:[%s2365_s3 + $0x58] sm:$0xff] }
   0xd   :  { %187 = vmatpush1.msra.mxu1 %v186_v42  ;;  %v143_v52 = vand.u32 4294901760, %v1905_v47  ;;  %v1967_v0 = vand.u32 4294901760, %v682_v63  ;;  %v2077_v41 = vand.u32 4294901760, %v674_v37  ;;  %p1743_p3 = por %p1742_p2, %p1741_p1 }
   0xe   :  { %v134_v53 = vand.u32 4294901760, %v133_v48  ;;  %193 = vmatprep.subr.mxu1 %v192_v45  ;;  %v214_v55 = vand.u32 4294901760, %v213_v50  ;;  %v220_v56 = vand.u32 4294901760, %v219_v51 }
   0xf   :  { %199 = vmatpush1.msra.mxu1 %v198_v46  ;;  %v144_v57 = vsub.f32 %v1905_v47, %v143_v52  ;;  %v1973_v2 = vsub.f32 %v682_v63, %v1967_v0  ;;  %p1744_p4 = pnand %p1743_p3, %p1737_p0 }
  0x10   :  { %135 = vmatmul.mubr.f32.vlgmr.msra.gmra.mxu0 %v134_v53  ;;  %205 = vmatprep.subr.mxu1 %v204_v49  ;;  %v215_v58 = vsub.f32 %v213_v50, %v214_v55  ;;  %v221_v59 = vsub.f32 %v219_v51, %v220_v56  ;;  %v672_v49 = vld [vmem:[%s2365_s3 + $0x28] sm:$0xff] }
  0x11   :  { %300 = vmatpush1.msra.mxu0 %v1846_v19  ;;  %140 = vmatprep.mubr.f32.mxu0 %v1758_v9  ;;  %v145_v60 = vand.u32 4294901760, %v144_v57  ;;  %v677_v19 = vld [vmem:[%s2365_s3 + $0x50] sm:$0xff]  ;;  %v2104_v53 = vand.u32 4294901760, %v672_v49 }
  0x12   :  { %303 = vmatprep.subr.mxu0 %v1854_v22  ;;  %211 = vmatpush1.msra.mxu1 %v210_v54  ;;  %v216_v61 = vand.u32 4294901760, %v215_v58  ;;  %v222_v62 = vand.u32 4294901760, %v221_v59 }
  0x13   :  { %306 = vmatpush1.msra.mxu0 %v1857_v23  ;;  %v2030_v23 = vand.u32 4294901760, %v677_v19  ;;  %v2117_v58 = vsub.f32 %v672_v49, %v2104_v53 }
  0x14   :  { %146 = vmatmul.mubr.f32.gmra.mxu0 %v145_v60  ;;  %217 = vmatprep.subr.mxu1 %v216_v61  ;;  %v670_v61 = vld [vmem:[%s2365_s3 + $0x18] sm:$0xff] }
  0x15   :  { %309 = vmatprep.subr.mxu0 %v1860_v24  ;;  %223 = vmatpush1.msra.mxu1 %v222_v62  ;;  %v2130_v63 = vand.u32 4294901760, %v2117_v58 }
  0x16   :  { %312 = vmatpush1.msra.mxu0 %v1868_v28  ;;  %258 = vmatmul.mubr.f32.vlgmr.msra.gmra.mxu1 %v1865_v27  ;;  %v2042_v28 = vsub.f32 %v677_v19, %v2030_v23 }
  0x17   :  { %315 = vmatprep.subr.mxu0 %v213_v50  ;;  %393 = vmatprep.subr.mxu1 %v1801_v3  ;;  %2418 = vst [vmem:[#allocation16_spill] sm:$0xff] %v2130_v63 }
  0x18   :  { %318 = vmatpush1.msra.mxu0 %v219_v51  ;;  %351 = vmatprep.mubr.f32.mxu0 %v1758_v9  ;;  %v2055_v33 = vand.u32 4294901760, %v2042_v28 }
  0x19   :  { %395 = vmatpush1.msra.mxu1 %v1803_v4  ;;  %354 = vmatmul.mubr.f32.vlgmr.msra.gmra.mxu0 %v1883_v35 }
  0x1a   :  { %397 = vmatprep.subr.mxu1 %v1805_v5  ;;  %486 = vmatprep.subr.mxu0 %v178_v25  ;;  %v676_v25 = vld [vmem:[%s2365_s3 + $0x48] sm:$0xff]  ;;  %2413 = vst [vmem:[#allocation11_spill] sm:$0xff] %v2055_v33  ;;  %v823_v38 = vsub.f32 %v2042_v28, %v2055_v33 }
  0x1b   :  { %263 = vmatprep.mubr.f32.mxu1 %v1758_v9  ;;  %399 = vmatpush1.msra.mxu1 %v1822_v10 }
  0x1c   :  { %490 = vmatpush1.msra.mxu0 %v184_v26  ;;  %265 = vmatmul.mubr.f32.gmra.mxu1 %v1896_v40  ;;  %v824_v44 = vand.u32 4294901760, %v823_v38 }
  0x1d   :  { %401 = vmatprep.subr.mxu1 %v1824_v11  ;;  %494 = vmatprep.subr.mxu0 %v190_v29  ;;  %v2044_v29 = vand.u32 4294901760, %v676_v25 }
  0x1e   :  { %359 = vmatprep.mubr.f32.mxu0 %v1758_v9  ;;  %403 = vmatpush1.msra.mxu1 %v1826_v12 }
  0x1f   :  { %498 = vmatpush1.msra.mxu0 %v196_v30  ;;  %405 = vmatprep.subr.mxu1 %v1838_v16  ;;  %v2058_v34 = vsub.f32 %v676_v25, %v2044_v29 }
  0x20   :  { %362 = vmatmul.mubr.f32.gmra.mxu0 %v1905_v47  ;;  %502 = vmatprep.subr.mxu0 %v202_v31  ;;  %v675_v31 = vld [vmem:[%s2365_s3 + $0x40] sm:$0xff]  ;;  %v2090_v47 = vsub.f32 %v674_v37, %v2077_v41 }
  0x21   :  { %407 = vmatpush1.msra.mxu1 %v1843_v18  ;;  %440 = vmatprep.mubr.f32.mxu1 %v1758_v9  ;;  %v2060_v35 = vand.u32 4294901760, %v675_v31  ;;  %v2072_v39 = vand.u32 4294901760, %v2058_v34 }
  0x22   :  { %506 = vmatpush1.msra.mxu0 %v208_v36  ;;  %444 = vmatmul.mubr.f32.vlgmr.msra.gmra.mxu1 %v132_v43  ;;  %v673_v43 = vld [vmem:[%s2365_s3 + $0x30] sm:$0xff] }
  0x23   :  { %510 = vmatprep.subr.mxu0 %v214_v55  ;;  %587 = vmatprep.subr.mxu1 %v1801_v3  ;;  %v1975_v3 = vand.u32 4294901760, %v681_v1  ;;  %2414 = vst [vmem:[#allocation12_spill] sm:$0xff] %v2072_v39  ;;  %v830_v45 = vsub.f32 %v2058_v34, %v2072_v39  ;;  %v2093_v48 = vand.u32 4294901760, %v673_v43  ;;  %v671_v55 = vld [vmem:[%s2365_s3 + $0x20] sm:$0xff] }
  0x24   :  { %514 = vmatpush1.msra.mxu0 %v220_v56  ;;  %547 = vmatprep.mubr.f32.mxu0 %v1758_v9  ;;  %v2119_v59 = vand.u32 4294901760, %v671_v55 }
  0x25   :  { %589 = vmatpush1.msra.mxu1 %v1803_v4  ;;  %549 = vmatmul.mubr.f32.vlgmr.msra.gmra.mxu0 %v1865_v27  ;;  %v680_v4 = vld [vmem:[%s2365_s3 + $0x68] sm:$0xff]  ;;  %v1986_v6 = vsub.f32 %v681_v1, %v1975_v3  ;;  %v831_v50 = vand.u32 4294901760, %v830_v45  ;;  %v2108_v54 = vsub.f32 %v673_v43, %v2093_v48 }
  0x26   :  { %591 = vmatprep.subr.mxu1 %v1805_v5  ;;  %449 = vmatprep.mubr.f32.mxu1 %v1758_v9  ;;  %v1983_v5 = vand.u32 4294901760, %v1973_v2  ;;  %v1988_v7 = vand.u32 4294901760, %v680_v4  ;;  %v2133_v1 = vsub.f32 %v671_v55, %v2119_v59 }
  0x27   :  { %593 = vmatpush1.msra.mxu1 %v1822_v10  ;;  %554 = vmatprep.mubr.f32.mxu0 %v1758_v9  ;;  %v1998_v10 = vand.u32 4294901760, %v1986_v6  ;;  %v2123_v60 = vand.u32 4294901760, %v2108_v54 }
  0x28   :  { %453 = vmatmul.mubr.f32.gmra.mxu1 %v143_v52  ;;  %595 = vmatprep.subr.mxu1 %v1824_v11  ;;  %2408 = vst [vmem:[#allocation6_spill] sm:$0xff] %v1983_v5  ;;  %v2001_v11 = vsub.f32 %v680_v4, %v1988_v7  ;;  %v2102_v52 = vand.u32 4294901760, %v2090_v47  ;;  %v2135_v4 = vand.u32 4294901760, %v670_v61 }
  0x29   :  { %597 = vmatpush1.msra.mxu1 %v1826_v12  ;;  %556 = vmatmul.mubr.f32.gmra.mxu0 %v1896_v40  ;;  %2409 = vst [vmem:[#allocation7_spill] sm:$0xff] %v1998_v10  ;;  %v2003_v12 = vand.u32 4294901760, %v679_v8  ;;  %v795_v15 = vsub.f32 %v1986_v6, %v1998_v10  ;;  %2417 = vst [vmem:[#allocation15_spill] sm:$0xff] %v2123_v60 }
  0x2a   :  { %599 = vmatprep.subr.mxu1 %v1838_v16  ;;  %634 = vmatprep.mubr.f32.mxu1 %v1758_v9  ;;  %v2013_v16 = vand.u32 4294901760, %v2001_v11  ;;  %2416 = vst [vmem:[#allocation14_spill] sm:$0xff] %v2102_v52  ;;  %v844_v57 = vsub.f32 %v2090_v47, %v2102_v52 }
  0x2b   :  { %601 = vmatpush1.msra.mxu1 %v1843_v18  ;;  %1514 = vmatprep.subr.mxu0 %v1967_v0  ;;  %v2016_v17 = vsub.f32 %v679_v8, %v2003_v12  ;;  %v2019_v18 = vand.u32 4294901760, %v678_v13  ;;  %v796_v20 = vand.u32 4294901760, %v795_v15  ;;  %v851_v8 = vsub.f32 %v2108_v54, %v2123_v60 }
  0x2c   :  { %636 = vmatmul.mubr.f32.vlgmr.msra.gmra.mxu1 %v1865_v27  ;;  %1515 = vmatpush3.msra.mxu0 %v1967_v0  ;;  %2410 = vst [vmem:[#allocation8_spill] sm:$0xff] %v2013_v16  ;;  %v802_v21 = vsub.f32 %v2001_v11, %v2013_v16  ;;  %v845_v62 = vand.u32 4294901760, %v844_v57  ;;  %v2150_v15 = vsub.f32 %v670_v61, %v2135_v4 }
  0x2d   :  { %641 = vmatprep.mubr.f32.mxu1 %v1758_v9  ;;  %1516 = vmatprep.subr.mxu0 %v1975_v3  ;;  %v788_v9 = vsub.f32 %v1973_v2, %v1983_v5  ;;  %v2028_v22 = vand.u32 4294901760, %v2016_v17  ;;  %v2033_v24 = vsub.f32 %v678_v13, %v2019_v18  ;;  %v858_v13 = vsub.f32 %v2117_v58, %v2130_v63 }
  0x2e   :  { %1517 = vmatpush3.msra.mxu0 %v1975_v3  ;;  %v803_v26 = vand.u32 4294901760, %v802_v21  ;;  %2420 = vst [vmem:[#allocation18_spill] sm:$0xff] %v2150_v15  ;;  %v668_v21 = vld [vmem:[%s2365_s3 + $0x8] sm:$0xff] }
  0x2f   :  { %1518 = vmatprep.subr.mxu0 %v1988_v7  ;;  %v789_v14 = vand.u32 4294901760, %v788_v9  ;;  %2411 = vst [vmem:[#allocation9_spill] sm:$0xff] %v2028_v22  ;;  %v809_v27 = vsub.f32 %v2016_v17, %v2028_v22  ;;  %v2048_v30 = vand.u32 4294901760, %v2033_v24  ;;  %v669_v9 = vld [vmem:[%s2365_s3 + $0x10] sm:$0xff]  ;;  %v859_v25 = vand.u32 4294901760, %v858_v13 }
  0x30   :  { %643 = vmatmul.mubr.f32.gmra.mxu1 %v1896_v40  ;;  %1519 = vmatpush3.msra.mxu0 %v1988_v7  ;;  %v2075_v40 = vsub.f32 %v675_v31, %v2060_v35  ;;  %v2152_v19 = vand.u32 4294901760, %v669_v9  ;;  %v40_v13 = vlaneseq }
  0x31   :  { %1520 = vmatprep.subr.mxu0 %v2003_v12  ;;  %1549 = vmatprep.subr.mxu1 %v789_v14  ;;  %2412 = vst [vmem:[#allocation10_spill] sm:$0xff] %v2048_v30  ;;  %v810_v32 = vand.u32 4294901760, %v809_v27  ;;  %v816_v36 = vsub.f32 %v2033_v24, %v2048_v30  ;;  %v2162_v27 = vand.u32 4294901760, %v2150_v15 }
  0x32   :  { %1521 = vmatpush3.msra.mxu0 %v2003_v12  ;;  %1550 = vmatpush3.msra.mxu1 %v789_v14  ;;  %v2087_v46 = vand.u32 4294901760, %v2075_v40  ;;  %v2147_v14 = vand.u32 4294901760, %v2133_v1  ;;  %v2165_v31 = vsub.f32 %v669_v9, %v2152_v19 }
  0x33   :  { %1522 = vmatprep.subr.mxu0 %v2019_v18  ;;  %1551 = vmatprep.subr.mxu1 %v796_v20  ;;  %v817_v42 = vand.u32 4294901760, %v816_v36  ;;  %2421 = vst [vmem:[#allocation19_spill] sm:$0xff] %v2162_v27  ;;  %v667_v36 = vld [vmem:[%s2365_s3] sm:$0xff]  ;;  %v872_v38 = vsub.f32 %v2150_v15, %v2162_v27 }
  0x34   :  { %1523 = vmatpush3.msra.mxu0 %v2019_v18  ;;  %1552 = vmatpush3.msra.mxu1 %v796_v20  ;;  %2415 = vst [vmem:[#allocation13_spill] sm:$0xff] %v2087_v46  ;;  %v837_v51 = vsub.f32 %v2075_v40, %v2087_v46  ;;  %2419 = vst [vmem:[#allocation17_spill] sm:$0xff] %v2147_v14  ;;  %v852_v20 = vand.u32 4294901760, %v851_v8  ;;  %v2179_v43 = vand.u32 4294901760, %v667_v36 }
  0x35   :  { %1524 = vmatprep.subr.mxu0 %v2030_v23  ;;  %1553 = vmatprep.subr.mxu1 %v803_v26  ;;  %2422 = vst [vmem:[#allocation20_spill] sm:$0xff] %v2165_v31  ;;  %v873_v45 = vand.u32 4294901760, %v872_v38 }
  0x36   :  { %1525 = vmatpush3.msra.mxu0 %v2030_v23  ;;  %1554 = vmatpush3.msra.mxu1 %v803_v26  ;;  %v838_v56 = vand.u32 4294901760, %v837_v51  ;;  %v865_v26 = vsub.f32 %v2133_v1, %v2147_v14 }
  0x37   :  { %1526 = vmatprep.subr.mxu0 %v2044_v29  ;;  %1555 = vmatprep.subr.mxu1 %v810_v32 }
  0x38   :  { %1527 = vmatpush3.msra.mxu0 %v2044_v29  ;;  %1556 = vmatpush3.msra.mxu1 %v810_v32  ;;  %v2168_v32 = vand.u32 4294901760, %v668_v21  ;;  %v866_v37 = vand.u32 4294901760, %v865_v26 }
  0x39   :  { %1528 = vmatprep.subr.mxu0 %v2060_v35  ;;  %1557 = vmatprep.subr.mxu1 %v817_v42 }
  0x3a   :  { %1529 = vmatpush3.msra.mxu0 %v2060_v35  ;;  %1558 = vmatpush3.msra.mxu1 %v817_v42  ;;  %v2177_v42 = vand.u32 4294901760, %v2165_v31 }
  0x3b   :  { %1530 = vmatprep.subr.mxu0 %v2077_v41  ;;  %1559 = vmatprep.subr.mxu1 %v824_v44 }
  0x3c   :  { %1531 = vmatpush3.msra.mxu0 %v2077_v41  ;;  %1560 = vmatpush3.msra.mxu1 %v824_v44  ;;  %2423 = vst [vmem:[#allocation21_spill] sm:$0xff] %v2177_v42  ;;  %v2183_v44 = vsub.f32 %v668_v21, %v2168_v32  ;;  %v879_v49 = vsub.f32 %v2165_v31, %v2177_v42 }
  0x3d   :  { %1532 = vmatprep.subr.mxu0 %v2093_v48  ;;  %1561 = vmatprep.subr.mxu1 %v831_v50 }
  0x3e   :  { %1533 = vmatpush3.msra.mxu0 %v2093_v48  ;;  %1562 = vmatpush3.msra.mxu1 %v831_v50  ;;  %2424 = vst [vmem:[#allocation22_spill] sm:$0xff] %v2183_v44  ;;  %v2189_v50 = vsub.f32 %v667_v36, %v2179_v43  ;;  %v2193_v51 = vand.u32 4294901760, %v2183_v44  ;;  %v880_v55 = vand.u32 4294901760, %v879_v49  ;;  %v38_v49 = vld [vmem:[%s2364_s2] sm:$0x3] }
  0x3f   :  { %1534 = vmatprep.subr.mxu0 %v2104_v53  ;;  %1563 = vmatprep.subr.mxu1 %v838_v56 }
  0x40   :  { %1535 = vmatpush3.msra.mxu0 %v2104_v53  ;;  %1564 = vmatpush3.msra.mxu1 %v838_v56  ;;  %2425 = vst [vmem:[#allocation23_spill] sm:$0xff] %v2189_v50  ;;  %2426 = vst [vmem:[#allocation24_spill] sm:$0xff] %v2193_v51  ;;  %v2197_v56 = vand.u32 4294901760, %v2189_v50  ;;  %v886_v57 = vsub.f32 %v2183_v44, %v2193_v51 }
  0x41   :  { %1536 = vmatprep.subr.mxu0 %v2119_v59  ;;  %1565 = vmatprep.subr.mxu1 %v845_v62 }
  0x42   :  { %1537 = vmatpush3.msra.mxu0 %v2119_v59  ;;  %1566 = vmatpush3.msra.mxu1 %v845_v62  ;;  %2427 = vst [vmem:[#allocation25_spill] sm:$0xff] %v2197_v56  ;;  %v893_v61 = vsub.f32 %v2189_v50, %v2197_v56  ;;  %v887_v62 = vand.u32 4294901760, %v886_v57 }
  0x43   :  { %1538 = vmatprep.subr.mxu0 %v2135_v4  ;;  %1567 = vmatprep.subr.mxu1 %v852_v20 }
  0x44   :  { %1539 = vmatpush3.msra.mxu0 %v2135_v4  ;;  %1568 = vmatpush3.msra.mxu1 %v852_v20  ;;  %v894_v8 = vand.u32 4294901760, %v893_v61 }
  0x45   :  { %1540 = vmatprep.subr.mxu0 %v2152_v19  ;;  %1569 = vmatprep.subr.mxu1 %v859_v25 }
  0x46   :  { %1541 = vmatpush3.msra.mxu0 %v2152_v19  ;;  %1570 = vmatpush3.msra.mxu1 %v859_v25  ;;  %v41_v25 = vshrl.u32 %v40_v13, 7 }
  0x47   :  { %1542 = vmatprep.subr.mxu0 %v2168_v32  ;;  %1571 = vmatprep.subr.mxu1 %v866_v37 }
  0x48   :  { %1543 = vmatpush3.msra.mxu0 %v2168_v32  ;;  %1572 = vmatpush3.msra.mxu1 %v866_v37  ;;  %v46_v38 = vsub.s32 1, %v41_v25 }
  0x49   :  { %1544 = vmatprep.subr.mxu0 %v2179_v43  ;;  %1573 = vmatprep.subr.mxu1 %v873_v45 }
  0x4a   :  { %1545 = vmatpush3.msra.mxu0 %v2179_v43  ;;  %1574 = vmatpush3.msra.mxu1 %v873_v45  ;;  %v47_v61 = vrot.slane %v38_v49, %v46_v38 }
  0x4b   :  { %1584 = vmatprep.subr.mxu0 %v1973_v2  ;;  %1575 = vmatprep.subr.mxu1 %v880_v55 }
  0x4c   :  { %1576 = vmatpush3.msra.mxu1 %v880_v55 }
  0x4d   :  { %1577 = vmatprep.subr.mxu1 %v887_v62 }
  0x4e   :  { %1578 = vmatpush3.msra.mxu1 %v887_v62 }
  0x4f   :  { %1579 = vmatprep.subr.mxu1 %v894_v8 }
  0x50   :  { %1580 = vmatpush3.msra.mxu1 %v894_v8 }
  0x51   :  { %1619 = vmatprep.subr.mxu1 %v1967_v0 }
  0xd0   :  { %v136_v9 = vpop.f32.mrf.mxu0 }
  0xd2   :  { %v138_v20 = vpop.f32.mrf.mxu0 }
  0xd3   :  { %v139_v56 = vadd.f32 %v138_v20, %v47_v61 }
  0xd4   :  { %v147_v21 = vpop.f32.mrf.mxu0 }
  0xd6   :  { %v149_v26 = vpop.f32.mrf.mxu0  ;;  %v259_v36 = vpop.f32.mrf.mxu1 }
  0xd7   :  { %v150_v13 = vadd.f32 %v149_v26, %v47_v61 }
  0xd8   :  { %v261_v37 = vpop.f32.mrf.mxu1 }
  0xd9   :  { %v355_v45 = vpop.f32.mrf.mxu0  ;;  %v262_v27 = vadd.f32 %v261_v37, %v139_v56 }
  0xdb   :  { %v357_v57 = vpop.f32.mrf.mxu0 }
  0xdc   :  { %v266_v55 = vpop.f32.mrf.mxu1  ;;  %v358_v60 = vadd.f32 %v357_v57, %v262_v27  ;;  %v42_v57 = vsub.s32 0, %v41_v25 }
  0xde   :  { %v268_v62 = vpop.f32.mrf.mxu1  ;;  %v43_v61 = vrot.slane %v38_v49, %v42_v57 }
  0xdf   :  { %v269_v52 = vadd.f32 %v268_v62, %v150_v13 }
  0xe0   :  { %v363_v8 = vpop.f32.mrf.mxu0 }
  0xe2   :  { %v365_v51 = vpop.f32.mrf.mxu0  ;;  %v445_v42 = vpop.f32.mrf.mxu1 }
  0xe3   :  { %v366_v16 = vadd.f32 %v365_v51, %v269_v52 }
  0xe4   :  { %v447_v14 = vpop.f32.mrf.mxu1 }
  0xe5   :  { %v550_v63 = vpop.f32.mrf.mxu0  ;;  %v448_v33 = vadd.f32 %v447_v14, %v358_v60  ;;  %v137_v14 = vadd.f32 %v136_v9, %v43_v61 }
  0xe7   :  { %v552_v46 = vpop.f32.mrf.mxu0 }
  0xe8   :  { %v454_v39 = vpop.f32.mrf.mxu1  ;;  %v553_v5 = vadd.f32 %v552_v46, %v448_v33  ;;  %v148_v33 = vadd.f32 %v147_v21, %v43_v61 }
  0xe9   :  { %v557_v22 = vpop.f32.mrf.mxu0 }
  0xea   :  { %v456_v30 = vpop.f32.mrf.mxu1  ;;  %v267_v46 = vadd.f32 %v266_v55, %v148_v33 }
  0xeb   :  { %v457_v38 = vadd.f32 %v456_v30, %v366_v16  ;;  %v559_v50 = vpop.f32.mrf.mxu0  ;;  %v260_v16 = vadd.f32 %v259_v36, %v137_v14 }
  0xec   :  { %v637_v10 = vpop.f32.mrf.mxu1 }
  0xed   :  { %v560_v15 = vadd.f32 %v559_v50, %v457_v38  ;;  %v364_v50 = vadd.f32 %v363_v8, %v267_v46 }
  0xee   :  { %v639_v44 = vpop.f32.mrf.mxu1 }
  0xef   :  { %v640_v20 = vadd.f32 %v639_v44, %v553_v5  ;;  %v356_v5 = vadd.f32 %v355_v45, %v260_v16  ;;  %v455_v13 = vadd.f32 %v454_v39, %v364_v50  ;;  %v666_v16 = vld [vmem:[#allocation2 + $0x8] sm:$0xff]  ;;  %v665_v50 = vld [vmem:[#allocation2] sm:$0xff] }
  0xf0   :  { %v644_v31 = vpop.f32.mrf.mxu1 }
  0xf1   :  { %v1403_v56 = vmul.f32 -1.442695, %v640_v20  ;;  %v446_v44 = vadd.f32 %v445_v42, %v356_v5  ;;  %v558_v25 = vadd.f32 %v557_v22, %v455_v13 }
  0xf2   :  { %v646_v37 = vpop.f32.mrf.mxu1 }
  0xf3   :  { %1728 = vpow2.f32 %v1403_v56  ;;  %v647_v26 = vadd.f32 %v646_v37, %v560_v15  ;;  %v551_v51 = vadd.f32 %v550_v63, %v446_v44 }
  0xf5   :  { %v1404_v27 = vmul.f32 -1.442695, %v647_v26  ;;  %v638_v38 = vadd.f32 %v637_v10, %v551_v51 }
  0xf7   :  { %1730 = vpow2.f32 %v1404_v27  ;;  %v645_v27 = vadd.f32 %v644_v31, %v558_v25 }
 0x100   :  { %v1729_v60 = vpop.eup %1728 }
 0x101   :  { %v655_v62 = vadd.f32 1.0, %v1729_v60 }
 0x103   :  { %1732 = vrcp.f32 %v655_v62 }
 0x104   :  { %v1731_v52 = vpop.eup %1730 }
 0x105   :  { %v656_v30 = vadd.f32 1.0, %v1731_v52 }
 0x107   :  { %1734 = vrcp.f32 %v656_v30 }
 0x110   :  { %v1733_v15 = vpop.eup %1732 }
 0x111   :  { %v661_v56 = vmul.f32 %v1733_v15, %v640_v20 }
 0x113   :  { %v663_v49 = vmul.f32 %v661_v56, %v638_v38  ;;  %v1405_v38 = vld [vmem:[%s2366_s4] ss:$0 sm:$0xff] }
 0x114   :  { %v1735_v37 = vpop.eup %1734 }
 0x115   :  { %v2209_v9 = vand.u32 4294901760, %v663_v49  ;;  %v662_v57 = vmul.f32 %v1735_v37, %v647_v26 }
 0x117   :  { %v765_v21 = vsub.f32 %v663_v49, %v2209_v9  ;;  %v664_v36 = vmul.f32 %v662_v57, %v645_v27  ;;  %1581 = vmatprep.mubr.f32.mxu1 %v2209_v9 }
 0x119   :  { %v2213_v45 = vand.u32 4294901760, %v664_v36  ;;  %v766_v42 = vand.u32 4294901760, %v765_v21 }
 0x11b   :  { %v2216_v39 = vsub.f32 %v664_v36, %v2213_v45  ;;  %1582 = vmatmul.mubr.f32.vlgmr.msra.gmra.mxu1 %v2213_v45  ;;  %v767_v10 = vsub.f32 %v765_v21, %v766_v42 }
 0x11c   :  { %1620 = vmatpush3.msra.mxu1 %v1967_v0  ;;  %1651 = vmatprep.mubr.f32.mxu1 %v766_v42 }
 0x11d   :  { %v776_v22 = vand.u32 4294901760, %v2216_v39  ;;  %1621 = vmatprep.subr.mxu1 %v1975_v3  ;;  %v768_v63 = vand.u32 4294901760, %v767_v10 }
 0x11e   :  { %1622 = vmatpush3.msra.mxu1 %v1975_v3 }
 0x11f   :  { %v777_v31 = vsub.f32 %v2216_v39, %v776_v22  ;;  %1623 = vmatprep.subr.mxu1 %v1988_v7  ;;  %1546 = vmatprep.mubr.f32.mxu0 %v768_v63 }
 0x120   :  { %1624 = vmatpush3.msra.mxu1 %v1988_v7 }
 0x121   :  { %v778_v55 = vand.u32 4294901760, %v777_v31  ;;  %1625 = vmatprep.subr.mxu1 %v2003_v12 }
 0x122   :  { %1626 = vmatpush3.msra.mxu1 %v2003_v12 }
 0x123   :  { %1627 = vmatprep.subr.mxu1 %v2019_v18  ;;  %1547 = vmatmul.mubr.f32.vlgmr.msra.gmra.mxu0 %v778_v55 }
 0x124   :  { %1585 = vmatpush3.msra.mxu0 %v1973_v2  ;;  %1628 = vmatpush3.msra.mxu1 %v2019_v18  ;;  %v2428_v2 = vld [vmem:[#allocation18_spill] sm:$0xff] }
 0x125   :  { %1586 = vmatprep.subr.mxu0 %v1986_v6  ;;  %1616 = vmatprep.mubr.f32.mxu0 %v765_v21 }
 0x126   :  { %1629 = vmatprep.subr.mxu1 %v2030_v23  ;;  %1587 = vmatpush3.msra.mxu0 %v1986_v6  ;;  %v2429_v6 = vld [vmem:[#allocation20_spill] sm:$0xff] }
 0x127   :  { %1630 = vmatpush3.msra.mxu1 %v2030_v23  ;;  %1588 = vmatprep.subr.mxu0 %v2001_v11 }
 0x128   :  { %1631 = vmatprep.subr.mxu1 %v2044_v29  ;;  %1589 = vmatpush3.msra.mxu0 %v2001_v11  ;;  %v2430_v11 = vld [vmem:[#allocation22_spill] sm:$0xff] }
 0x129   :  { %1632 = vmatpush3.msra.mxu1 %v2044_v29  ;;  %1590 = vmatprep.subr.mxu0 %v2016_v17 }
 0x12a   :  { %1633 = vmatprep.subr.mxu1 %v2060_v35  ;;  %1591 = vmatpush3.msra.mxu0 %v2016_v17  ;;  %v2431_v17 = vld [vmem:[#allocation23_spill] sm:$0xff] }
 0x12b   :  { %1634 = vmatpush3.msra.mxu1 %v2060_v35  ;;  %1592 = vmatprep.subr.mxu0 %v2033_v24 }
 0x12c   :  { %1635 = vmatprep.subr.mxu1 %v2077_v41  ;;  %1593 = vmatpush3.msra.mxu0 %v2033_v24  ;;  %v2438_v24 = vld [vmem:[#allocation12_spill] sm:$0xff] }
 0x12d   :  { %1636 = vmatpush3.msra.mxu1 %v2077_v41  ;;  %1594 = vmatprep.subr.mxu0 %v2042_v28 }
 0x12e   :  { %1637 = vmatprep.subr.mxu1 %v2093_v48  ;;  %1595 = vmatpush3.msra.mxu0 %v2042_v28  ;;  %v2439_v28 = vld [vmem:[#allocation13_spill] sm:$0xff] }
 0x12f   :  { %1638 = vmatpush3.msra.mxu1 %v2093_v48  ;;  %1596 = vmatprep.subr.mxu0 %v2058_v34 }
 0x130   :  { %1639 = vmatprep.subr.mxu1 %v2104_v53  ;;  %1597 = vmatpush3.msra.mxu0 %v2058_v34  ;;  %v2441_v34 = vld [vmem:[#allocation15_spill] sm:$0xff] }
 0x131   :  { %1640 = vmatpush3.msra.mxu1 %v2104_v53  ;;  %1598 = vmatprep.subr.mxu0 %v2075_v40 }
 0x132   :  { %1641 = vmatprep.subr.mxu1 %v2119_v59  ;;  %1599 = vmatpush3.msra.mxu0 %v2075_v40  ;;  %v2443_v40 = vld [vmem:[#allocation17_spill] sm:$0xff] }
 0x133   :  { %1642 = vmatpush3.msra.mxu1 %v2119_v59  ;;  %1600 = vmatprep.subr.mxu0 %v2090_v47 }
 0x134   :  { %1643 = vmatprep.subr.mxu1 %v2135_v4  ;;  %1601 = vmatpush3.msra.mxu0 %v2090_v47  ;;  %v2445_v47 = vld [vmem:[#allocation21_spill] sm:$0xff] }
 0x135   :  { %1644 = vmatpush3.msra.mxu1 %v2135_v4  ;;  %1602 = vmatprep.subr.mxu0 %v2108_v54 }
 0x136   :  { %1645 = vmatprep.subr.mxu1 %v2152_v19  ;;  %1603 = vmatpush3.msra.mxu0 %v2108_v54 }
 0x137   :  { %1646 = vmatpush3.msra.mxu1 %v2152_v19  ;;  %1604 = vmatprep.subr.mxu0 %v2117_v58 }
 0x138   :  { %1647 = vmatprep.subr.mxu1 %v2168_v32  ;;  %1605 = vmatpush3.msra.mxu0 %v2117_v58 }
 0x139   :  { %1648 = vmatpush3.msra.mxu1 %v2168_v32  ;;  %1606 = vmatprep.subr.mxu0 %v2133_v1 }
 0x13a   :  { %1649 = vmatprep.subr.mxu1 %v2179_v43  ;;  %1607 = vmatpush3.msra.mxu0 %v2133_v1 }
 0x13b   :  { %1650 = vmatpush3.msra.mxu1 %v2179_v43  ;;  %1608 = vmatprep.subr.mxu0 %v2428_v2 }
 0x13c   :  { %1652 = vmatmul.mubr.f32.vlgmr.msra.gmra.mxu1 %v776_v22  ;;  %1689 = vmatprep.subr.mxu1 %v1967_v0 }
 0x13d   :  { %1609 = vmatpush3.msra.mxu0 %v2428_v2  ;;  %1690 = vmatpush3.msra.mxu1 %v1967_v0  ;;  %v2432_v0 = vld [vmem:[#allocation6_spill] sm:$0xff] }
 0x13e   :  { %1721 = vmatprep.mubr.f32.mxu1 %v2209_v9  ;;  %1610 = vmatprep.subr.mxu0 %v2429_v6 }
 0x13f   :  { %1691 = vmatprep.subr.mxu1 %v1975_v3  ;;  %1611 = vmatpush3.msra.mxu0 %v2429_v6 }
 0x140   :  { %1692 = vmatpush3.msra.mxu1 %v1975_v3  ;;  %1612 = vmatprep.subr.mxu0 %v2430_v11  ;;  %v2433_v3 = vld [vmem:[#allocation7_spill] sm:$0xff] }
 0x141   :  { %1693 = vmatprep.subr.mxu1 %v1988_v7  ;;  %1613 = vmatpush3.msra.mxu0 %v2430_v11 }
 0x142   :  { %1694 = vmatpush3.msra.mxu1 %v1988_v7  ;;  %1614 = vmatprep.subr.mxu0 %v2431_v17  ;;  %v2434_v7 = vld [vmem:[#allocation8_spill] sm:$0xff] }
 0x143   :  { %1695 = vmatprep.subr.mxu1 %v2003_v12  ;;  %1615 = vmatpush3.msra.mxu0 %v2431_v17 }
 0x144   :  { %1696 = vmatpush3.msra.mxu1 %v2003_v12  ;;  %1617 = vmatmul.mubr.f32.vlgmr.msra.gmra.mxu0 %v2216_v39  ;;  %v2435_v12 = vld [vmem:[#allocation9_spill] sm:$0xff] }
 0x145   :  { %1654 = vmatprep.subr.mxu0 %v2432_v0  ;;  %1697 = vmatprep.subr.mxu1 %v2019_v18 }
 0x146   :  { %1655 = vmatpush3.msra.mxu0 %v2432_v0  ;;  %1686 = vmatprep.mubr.f32.mxu0 %v2209_v9 }
 0x147   :  { %1698 = vmatpush3.msra.mxu1 %v2019_v18  ;;  %1656 = vmatprep.subr.mxu0 %v2433_v3  ;;  %v2436_v18 = vld [vmem:[#allocation10_spill] sm:$0xff] }
 0x148   :  { %1699 = vmatprep.subr.mxu1 %v2030_v23  ;;  %1657 = vmatpush3.msra.mxu0 %v2433_v3 }
 0x149   :  { %1700 = vmatpush3.msra.mxu1 %v2030_v23  ;;  %1658 = vmatprep.subr.mxu0 %v2434_v7  ;;  %v2437_v23 = vld [vmem:[#allocation11_spill] sm:$0xff] }
 0x14a   :  { %1701 = vmatprep.subr.mxu1 %v2044_v29  ;;  %1659 = vmatpush3.msra.mxu0 %v2434_v7 }
 0x14b   :  { %1702 = vmatpush3.msra.mxu1 %v2044_v29  ;;  %1660 = vmatprep.subr.mxu0 %v2435_v12  ;;  %v2440_v29 = vld [vmem:[#allocation14_spill] sm:$0xff] }
 0x14c   :  { %1703 = vmatprep.subr.mxu1 %v2060_v35  ;;  %1661 = vmatpush3.msra.mxu0 %v2435_v12 }
 0x14d   :  { %1704 = vmatpush3.msra.mxu1 %v2060_v35  ;;  %1662 = vmatprep.subr.mxu0 %v2436_v18  ;;  %v2442_v35 = vld [vmem:[#allocation16_spill] sm:$0xff] }
 0x14e   :  { %1705 = vmatprep.subr.mxu1 %v2077_v41  ;;  %1663 = vmatpush3.msra.mxu0 %v2436_v18 }
 0x14f   :  { %1706 = vmatpush3.msra.mxu1 %v2077_v41  ;;  %1664 = vmatprep.subr.mxu0 %v2437_v23  ;;  %v2444_v41 = vld [vmem:[#allocation19_spill] sm:$0xff] }
 0x150   :  { %1707 = vmatprep.subr.mxu1 %v2093_v48  ;;  %1665 = vmatpush3.msra.mxu0 %v2437_v23 }
 0x151   :  { %1708 = vmatpush3.msra.mxu1 %v2093_v48  ;;  %1666 = vmatprep.subr.mxu0 %v2438_v24  ;;  %v2446_v48 = vld [vmem:[#allocation24_spill] sm:$0xff] }
 0x152   :  { %1709 = vmatprep.subr.mxu1 %v2104_v53  ;;  %1667 = vmatpush3.msra.mxu0 %v2438_v24 }
 0x153   :  { %1710 = vmatpush3.msra.mxu1 %v2104_v53  ;;  %1668 = vmatprep.subr.mxu0 %v2439_v28  ;;  %v2447_v53 = vld [vmem:[#allocation25_spill] sm:$0xff] }
 0x154   :  { %1711 = vmatprep.subr.mxu1 %v2119_v59  ;;  %1669 = vmatpush3.msra.mxu0 %v2439_v28 }
 0x155   :  { %1712 = vmatpush3.msra.mxu1 %v2119_v59  ;;  %1670 = vmatprep.subr.mxu0 %v2440_v29 }
 0x156   :  { %1713 = vmatprep.subr.mxu1 %v2135_v4  ;;  %1671 = vmatpush3.msra.mxu0 %v2440_v29 }
 0x157   :  { %1714 = vmatpush3.msra.mxu1 %v2135_v4  ;;  %1672 = vmatprep.subr.mxu0 %v2441_v34 }
 0x158   :  { %1715 = vmatprep.subr.mxu1 %v2152_v19  ;;  %1673 = vmatpush3.msra.mxu0 %v2441_v34 }
 0x159   :  { %1716 = vmatpush3.msra.mxu1 %v2152_v19  ;;  %1674 = vmatprep.subr.mxu0 %v2442_v35 }
 0x15a   :  { %1717 = vmatprep.subr.mxu1 %v2168_v32  ;;  %1675 = vmatpush3.msra.mxu0 %v2442_v35 }
 0x15b   :  { %1718 = vmatpush3.msra.mxu1 %v2168_v32  ;;  %1676 = vmatprep.subr.mxu0 %v2443_v40 }
 0x15c   :  { %1719 = vmatprep.subr.mxu1 %v2179_v43  ;;  %1677 = vmatpush3.msra.mxu0 %v2443_v40 }
 0x15d   :  { %1720 = vmatpush3.msra.mxu1 %v2179_v43  ;;  %1678 = vmatprep.subr.mxu0 %v2444_v41 }
 0x15e   :  { %1722 = vmatmul.mubr.f32.vlgmr.msra.gmra.mxu1 %v2213_v45  ;;  %1679 = vmatpush3.msra.mxu0 %v2444_v41 }
 0x15f   :  { %1680 = vmatprep.subr.mxu0 %v2445_v47 }
 0x160   :  { %1681 = vmatpush3.msra.mxu0 %v2445_v47 }
 0x161   :  { %1682 = vmatprep.subr.mxu0 %v2446_v48 }
 0x162   :  { %1683 = vmatpush3.msra.mxu0 %v2446_v48 }
 0x163   :  { %1684 = vmatprep.subr.mxu0 %v2447_v53 }
 0x164   :  { %1685 = vmatpush3.msra.mxu0 %v2447_v53 }
 0x165   :  { %1687 = vmatmul.mubr.f32.vlgmr.msra.gmra.mxu0 %v2213_v45 }
 0x1db   :  { %v1583_v58 = vpop.f32.mrf.mxu1 }
 0x1dd   :  { %v931_v4 = vpop.f32.mrf.mxu1 }
 0x1e3   :  { %v1548_v54 = vpop.f32.mrf.mxu0 }
 0x1e4   :  { %v938_v19 = vadd.f32 %v1583_v58, %v1548_v54 }
 0x1e5   :  { %v770_v59 = vpop.f32.mrf.mxu0 }
 0x1e6   :  { %v932_v8 = vadd.f32 %v931_v4, %v770_v59 }
 0x1fc   :  { %v1653_v32 = vpop.f32.mrf.mxu1 }
 0x1fe   :  { %v1137_v61 = vpop.f32.mrf.mxu1 }
 0x204   :  { %v1618_v1 = vpop.f32.mrf.mxu0 }
 0x205   :  { %v1049_v20 = vadd.f32 %v1618_v1, %v938_v19 }
 0x206   :  { %v1041_v43 = vpop.f32.mrf.mxu0 }
 0x207   :  { %v1042_v26 = vadd.f32 %v1041_v43, %v932_v8  ;;  %v1146_v60 = vadd.f32 %v1653_v32, %v1049_v20 }
 0x209   :  { %v1138_v33 = vadd.f32 %v1137_v61, %v1042_v26 }
 0x21e   :  { %v1723_v14 = vpop.f32.mrf.mxu1 }
 0x220   :  { %v1357_v44 = vpop.f32.mrf.mxu1 }
 0x225   :  { %v1688_v62 = vpop.f32.mrf.mxu0 }
 0x226   :  { %v1271_v52 = vadd.f32 %v1688_v62, %v1146_v60 }
 0x227   :  { %v1264_v30 = vpop.f32.mrf.mxu0 }
 0x228   :  { %v1364_v5 = vadd.f32 %v1723_v14, %v1271_v52  ;;  %v1265_v46 = vadd.f32 %v1264_v30, %v1138_v33 }
 0x22a   :  { %v1368_v51 = vadd.f32 %v1364_v5, %v666_v16  ;;  %v1358_v13 = vadd.f32 %v1357_v44, %v1265_v46 }
 0x22c   :  { %1370 = vst.msk [vmem:[#allocation2 + $0x8] sm:$0xff] %vm25_vm0, %v1368_v51  ;;  %v1367_v15 = vadd.f32 %v1358_v13, %v665_v50 }
 0x22e   :  { %1369 = vst.msk [vmem:[#allocation2] sm:$0xff] %vm25_vm0, %v1367_v15 }
 0x233   :  { %v1375_v56 = vld [vmem:[#allocation2 + $0x8] sm:$0xff] }
 0x234   :  { %v1384_v25 = vadd.f32 %v1405_v38, %v1375_v56 }
 0x235   :  { %v1374_v49 = vld [vmem:[#allocation2] sm:$0xff] }
 0x236   :  { %v1383_v37 = vadd.f32 %v1405_v38, %v1374_v49  ;;  %1386 = vst.msk [vmem:[#allocation3 + $0x8] sm:$0xff] %vm25_vm0, %v1384_v25 }
 0x238   :  { %1385 = vst.msk [vmem:[#allocation3] sm:$0xff] %vm25_vm0, %v1383_v37 }
 0x239   :  { %1747 = shalt.err (!%p1744_p4)
}
 0x23a   :  { %s1760_s21 = smov 128   ;;  %s1761_s4 = smov 8  }
 0x23b   :  { %1398 = dma.vmem_to_hbm [thread:$0]  %s1393_s19, 256, %s2367_s5, [#allocation4], %s1760_s21, %s1760_s21, %s1761_s4  }
 0x23c   :  { %1756 = dma.done.wait [#allocation4], 256  }
 0x23d   :  { %1757 = vsyncadd [#allocation4], 4294967040 }
 0x23e   :  { %1402 = vsyncpa [#allocation4], 1 }

</bundles_post_ra>
